<compile_context>
chip_gen: v6e
topology: v6e:2x2x1
jax: 0.10.0
libtpu: 0.0.40
codegen_flags: <defaults>
</compile_context>

<pallas_src>
import jax
import jax.numpy as jnp
from jax.experimental import pallas as pl
from jax.experimental.pallas import tpu as pltpu


def _round_up(x, m):
    return ((x + m - 1) // m) * m


def im2col_3x3(x_nhwc):
    """3x3, stride 1, pad 1 im2col.  Returns (N, H*W, 9*C) in x's dtype."""
    N, H, W, C = x_nhwc.shape
    xp = jnp.pad(x_nhwc, ((0, 0), (1, 1), (1, 1), (0, 0)))
    patches = [xp[:, i:i + H, j:j + W, :] for i in range(3) for j in range(3)]
    return jnp.concatenate(patches, axis=-1).reshape(N, H * W, 9 * C)


def ranzcr_forward(x_nchw, conv_w, conv_b, head_w, head_b, *,
                   tile_m=512, n_batch_splits=2):
    """x_nchw: (N, Cin, H, W).  conv_w: (Cf, Cin, 3, 3) (PyTorch OIHW layout).
    head_w: (NC, Cf), head_b: (NC,) (PyTorch nn.Linear layout)."""
    N, Cin, H, W = x_nchw.shape
    Cf = conv_w.shape[0]
    NC = head_w.shape[0]
    HW = H * W
    K = 9 * Cin

    # --- padding / tiling plan ------------------------------------------------
    K_pad = _round_up(K, 32)           # small contraction pad (full-dim rule)
    Cf_pad = _round_up(Cf, 128)        # lane-dense feature channels
    NC_pad = _round_up(NC, 128)        # lane-dense logits (unmasked vst)

    NB = max(1, min(n_batch_splits, N))      # batch groups -> parallel grid axis
    NG = -(-N // NB)                          # images per group
    N_img_pad = NB * NG
    NG_pad8 = _round_up(NG, 8)                # sublane-aligned pooled rows

    NHW_g = NG * HW                           # flattened rows per group
    tile_m = _round_up(tile_m, 128)
    TM = min(tile_m, _round_up(NHW_g, 128))
    NHW_g_pad = _round_up(NHW_g, TM)
    n_tiles = NHW_g_pad // TM

    # --- glue: layout conversion + im2col, all in bf16 -------------------------
    x_nhwc = jnp.transpose(x_nchw, (0, 2, 3, 1)).astype(jnp.bfloat16)
    patches = im2col_3x3(x_nhwc)                              # (N, HW, K) bf16
    patches = jnp.pad(patches, ((0, N_img_pad - N), (0, 0), (0, K_pad - K)))
    patches = patches.reshape(NB, NHW_g, K_pad)
    patches = jnp.pad(patches, ((0, 0), (0, NHW_g_pad - NHW_g), (0, 0)))
    patches = patches.reshape(NB * NHW_g_pad, K_pad)          # bf16

    # Conv weight: (Cf, Cin, kh, kw) -> (kh, kw, Cin, Cf) -> (K, Cf); matches
    # the im2col column ordering (i, j, c) with c fastest.
    wc = jnp.transpose(conv_w, (2, 3, 1, 0)).reshape(K, Cf).astype(jnp.float32)
    wc = jnp.pad(wc, ((0, K_pad - K), (0, Cf_pad - Cf))).astype(jnp.bfloat16)
    bc = jnp.pad(conv_b.reshape(1, Cf).astype(jnp.float32),
                 ((0, 0), (0, Cf_pad - Cf)))                  # (1, Cf_pad) f32

    wh = jnp.pad(head_w.T.astype(jnp.float32),
                 ((0, Cf_pad - Cf), (0, NC_pad - NC)))        # (Cf_pad, NC_pad)
    bh = jnp.pad(head_b.reshape(1, NC).astype(jnp.float32),
                 ((0, 0), (0, NC_pad - NC)))                  # (1, NC_pad)

    # --- kernel (closure over HW) ----------------------------------------------
    def kernel(patch_ref, wc_ref, bc_ref, wh_ref, bh_ref, out_ref, pooled_acc):
        t = pl.program_id(1)

        @pl.when(t == 0)
        def _():
            pooled_acc[...] = jnp.zeros_like(pooled_acc)

        # Conv as an MXU matmul (bf16 in, f32 accumulate) + bias + ReLU.
        feat = jnp.dot(patch_ref[...], wc_ref[...],
                       preferred_element_type=jnp.float32)
        feat = jnp.maximum(feat + bc_ref[...], 0.0)           # (TM, Cf_pad) f32
        feat_bf = feat.astype(jnp.bfloat16)

        # AdaptiveAvgPool2d(1) as an MXU reduction with an in-kernel generated
        # bf16 0/1 indicator: row i of the indicator selects the spatial rows
        # of image i in this group (1/HW scale deferred to the final step).
        # Padded/zero patch rows (global col >= NG*HW) only ever match padded
        # output rows i >= NG, so relu(bias) garbage never reaches real images.
        rows = jax.lax.broadcasted_iota(jnp.int32, (NG_pad8, TM), 0)
        cols = jax.lax.broadcasted_iota(jnp.int32, (NG_pad8, TM), 1)
        g = t * TM + cols
        lo = rows * HW
        ind = jnp.logical_and(g >= lo, g < lo + HW).astype(jnp.bfloat16)

        pooled_acc[...] += jnp.dot(ind, feat_bf,
                                   preferred_element_type=jnp.float32)

        @pl.when(t == pl.num_programs(1) - 1)
        def _():
            # Dropout(0.3) in eval mode = identity; Linear head (f32, exact
            # 1/HW scale applied here).
            pooled = pooled_acc[...] * jnp.float32(1.0 / HW)
            out_ref[...] = jnp.dot(pooled, wh_ref[...],
                                   preferred_element_type=jnp.float32) \
                           + bh_ref[...]

    # --- specs ------------------------------------------------------------------
    patch_index = lambda b, t: (b * n_tiles + t, 0)
    if n_tiles >= 3:
        # Deeper buffering only pays when the patch stream is long (v5e).
        patch_spec = pl.BlockSpec((TM, K_pad), patch_index,
                                  pipeline_mode=pl.Buffered(3))
    else:
        patch_spec = pl.BlockSpec((TM, K_pad), patch_index)

    out = pl.pallas_call(
        kernel,
        out_shape=jax.ShapeDtypeStruct((NB * NG_pad8, NC_pad), jnp.float32),
        grid_spec=pltpu.PrefetchScalarGridSpec(
            num_scalar_prefetch=0,
            grid=(NB, n_tiles),
            in_specs=[
                patch_spec,
                pl.BlockSpec((K_pad, Cf_pad), lambda b, t: (0, 0)),
                pl.BlockSpec((1, Cf_pad), lambda b, t: (0, 0)),
                pl.BlockSpec((Cf_pad, NC_pad), lambda b, t: (0, 0)),
                pl.BlockSpec((1, NC_pad), lambda b, t: (0, 0)),
            ],
            out_specs=pl.BlockSpec((NG_pad8, NC_pad), lambda b, t: (b, 0)),
            scratch_shapes=[pltpu.VMEM((NG_pad8, Cf_pad), jnp.float32)],
        ),
        compiler_params=pltpu.CompilerParams(
            dimension_semantics=("parallel", "arbitrary"),
            vmem_limit_bytes=32 * 1024 * 1024),
    )(patches, wc, bc, wh, bh)

    # Gather the real images out of the padded per-group layout -> (N, 11).
    img = jnp.arange(N)
    row_idx = (img // NG) * NG_pad8 + (img % NG)
    return out[row_idx][:, :NC]


def ranzcr_reference(x_nchw, conv_w, conv_b, head_w, head_b):
    """Plain-JAX (f32) reference of the same forward pass."""
    feat = jax.lax.conv_general_dilated(
        x_nchw.astype(jnp.float32), conv_w.astype(jnp.float32),
        window_strides=(1, 1), padding=((1, 1), (1, 1)),
        dimension_numbers=("NCHW", "OIHW", "NCHW"))
    feat = jax.nn.relu(feat + conv_b.reshape(1, -1, 1, 1))
    pooled = jnp.mean(feat, axis=(2, 3))                      # (N, Cf)
    return pooled @ head_w.T + head_b


if __name__ == "__main__":
    key = jax.random.PRNGKey(0)
    k_x, k_cw, k_cb, k_hw, k_hb = jax.random.split(key, 5)

    N, Cin, H, W = 2, 3, 16, 16     # small image-like input (NCHW)
    Cf = 32                         # synthetic backbone feature channels (n_out)
    NC = 11                         # n_classes

    x = jax.random.normal(k_x, (N, Cin, H, W), jnp.float32)
    conv_w = jax.random.normal(k_cw, (Cf, Cin, 3, 3), jnp.float32) * 0.1
    conv_b = jax.random.normal(k_cb, (Cf,), jnp.float32) * 0.1
    head_w = jax.random.normal(k_hw, (NC, Cf), jnp.float32) * 0.1
    head_b = jax.random.normal(k_hb, (NC,), jnp.float32) * 0.1

    out = ranzcr_forward(x, conv_w, conv_b, head_w, head_b)
    out = jax.block_until_ready(out)

    ref = jax.block_until_ready(
        ranzcr_reference(x, conv_w, conv_b, head_w, head_b))
    assert out.shape == (N, NC), out.shape
    assert jnp.allclose(out, ref, rtol=1e-2, atol=1e-2), \
        float(jnp.max(jnp.abs(out - ref)))

    print("KERNEL_OK")
</pallas_src>

<mosaic_0001>
module attributes {stable_mosaic.version = 11 : i64} {
  func.func @kernel(%arg0: i32, %arg1: i32, %arg2: memref<256x32xbf16, #tpu.memory_space<vmem>>, %arg3: memref<32x128xbf16, #tpu.memory_space<vmem>>, %arg4: memref<1x128xf32, #tpu.memory_space<vmem>>, %arg5: memref<128x128xf32, #tpu.memory_space<vmem>>, %arg6: memref<1x128xf32, #tpu.memory_space<vmem>>, %arg7: memref<8x128xf32, #tpu.memory_space<vmem>>, %arg8: memref<8x128xf32, #tpu.memory_space<vmem>>) attributes {dimension_semantics = [#tpu.dimension_semantics<parallel>, #tpu.dimension_semantics<arbitrary>], iteration_bounds = array<i64: 2, 1>, scalar_prefetch = 0 : i64, scratch_operands = 1 : i64, tpu.core_type = #tpu.core_type<tc>, window_params = [{transform_indices = @transform_0, window_bounds = array<i64: 256, 32>}, {pipeline_mode = #tpu.pipeline_mode<synchronous>, transform_indices = @transform_1, window_bounds = array<i64: 32, 128>}, {pipeline_mode = #tpu.pipeline_mode<synchronous>, transform_indices = @transform_2, window_bounds = array<i64: 1, 128>}, {pipeline_mode = #tpu.pipeline_mode<synchronous>, transform_indices = @transform_3, window_bounds = array<i64: 128, 128>}, {pipeline_mode = #tpu.pipeline_mode<synchronous>, transform_indices = @transform_4, window_bounds = array<i64: 1, 128>}, {transform_indices = @transform_5, window_bounds = array<i64: 8, 128>}]} {
    %c0_i32 = arith.constant 0 : i32
    %0 = arith.cmpi eq, %arg1, %c0_i32 : i32
    %1 = arith.extui %0 : i1 to i32
    %c0_i32_0 = arith.constant 0 : i32
    %2 = arith.cmpi ne, %1, %c0_i32_0 : i32
    scf.if %2 {
      %cst_16 = arith.constant 0.000000e+00 : f32
      %34 = vector.broadcast %cst_16 : f32 to vector<8x128xf32>
      %c0_17 = arith.constant 0 : index
      %c0_18 = arith.constant 0 : index
      %35 = vector.load %arg8[%c0_17, %c0_18] : memref<8x128xf32, #tpu.memory_space<vmem>>, vector<8x128xf32>
      tpu.vector_store %arg8[%c0_17, %c0_18], %34 {strides = array<i32>} : memref<8x128xf32, #tpu.memory_space<vmem>>, vector<8x128xf32>,
    } else {
    }
    %c0 = arith.constant 0 : index
    %c0_1 = arith.constant 0 : index
    %3 = vector.load %arg2[%c0, %c0_1] : memref<256x32xbf16, #tpu.memory_space<vmem>>, vector<256x32xbf16>
    %c0_2 = arith.constant 0 : index
    %c0_3 = arith.constant 0 : index
    %4 = vector.load %arg3[%c0_2, %c0_3] : memref<32x128xbf16, #tpu.memory_space<vmem>>, vector<32x128xbf16>
    %cst = arith.constant dense<0.000000e+00> : vector<256x128xf32>
    %5 = tpu.matmul %3, %4, %cst {dimension_numbers = #tpu.dot_dimension_numbers<[1], [0], [0], [1], [0, 0, 1, 1], [], []>} : vector<256x32xbf16>, vector<32x128xbf16>, vector<256x128xf32> -> vector<256x128xf32>
    %c0_4 = arith.constant 0 : index
    %c0_5 = arith.constant 0 : index
    %6 = vector.load %arg4[%c0_4, %c0_5] : memref<1x128xf32, #tpu.memory_space<vmem>>, vector<1x128xf32>
    %7 = vector.broadcast %6 : vector<1x128xf32> to vector<256x128xf32>
    %8 = arith.addf %5, %7 : vector<256x128xf32>
    %cst_6 = arith.constant 0.000000e+00 : f32
    %9 = vector.broadcast %cst_6 : f32 to vector<256x128xf32>
    %10 = arith.maximumf %8, %9 : vector<256x128xf32>
    %11 = arith.truncf %10 : vector<256x128xf32> to vector<256x128xbf16>
    %12 = tpu.iota {dimensions = array<i32: 0>} : vector<8x256xi32>
    %13 = tpu.iota {dimensions = array<i32: 1>} : vector<8x256xi32>
    %c256_i32 = arith.constant 256 : i32
    %14 = arith.muli %arg1, %c256_i32 : i32
    %15 = vector.broadcast %14 : i32 to vector<8x256xi32>
    %16 = arith.addi %15, %13 : vector<8x256xi32>
    %c256_i32_7 = arith.constant 256 : i32
    %17 = vector.broadcast %c256_i32_7 : i32 to vector<8x256xi32>
    %18 = arith.muli %12, %17 : vector<8x256xi32>
    %19 = arith.cmpi sge, %16, %18 : vector<8x256xi32>
    %c256_i32_8 = arith.constant 256 : i32
    %20 = vector.broadcast %c256_i32_8 : i32 to vector<8x256xi32>
    %21 = arith.addi %18, %20 : vector<8x256xi32>
    %22 = arith.cmpi slt, %16, %21 : vector<8x256xi32>
    %23 = arith.andi %19, %22 : vector<8x256xi1>
    %24 = arith.extui %23 : vector<8x256xi1> to vector<8x256xi32>
    %25 = arith.sitofp %24 : vector<8x256xi32> to vector<8x256xf32>
    %26 = arith.truncf %25 : vector<8x256xf32> to vector<8x256xbf16>
    %c0_9 = arith.constant 0 : index
    %c0_10 = arith.constant 0 : index
    %27 = vector.load %arg8[%c0_9, %c0_10] : memref<8x128xf32, #tpu.memory_space<vmem>>, vector<8x128xf32>
    %cst_11 = arith.constant dense<0.000000e+00> : vector<8x128xf32>
    %28 = tpu.matmul %26, %11, %cst_11 {dimension_numbers = #tpu.dot_dimension_numbers<[1], [0], [0], [1], [0, 0, 1, 1], [], []>} : vector<8x256xbf16>, vector<256x128xbf16>, vector<8x128xf32> -> vector<8x128xf32>
    %29 = arith.addf %27, %28 : vector<8x128xf32>
    %c0_12 = arith.constant 0 : index
    %c0_13 = arith.constant 0 : index
    %30 = vector.load %arg8[%c0_12, %c0_13] : memref<8x128xf32, #tpu.memory_space<vmem>>, vector<8x128xf32>
    tpu.vector_store %arg8[%c0_12, %c0_13], %29 {strides = array<i32>} : memref<8x128xf32, #tpu.memory_space<vmem>>, vector<8x128xf32>,
    %c0_i32_14 = arith.constant 0 : i32
    %31 = arith.cmpi eq, %arg1, %c0_i32_14 : i32
    %32 = arith.extui %31 : i1 to i32
    %c0_i32_15 = arith.constant 0 : i32
    %33 = arith.cmpi ne, %32, %c0_i32_15 : i32
    scf.if %33 {
      %c0_16 = arith.constant 0 : index
      %c0_17 = arith.constant 0 : index
      %34 = vector.load %arg8[%c0_16, %c0_17] : memref<8x128xf32, #tpu.memory_space<vmem>>, vector<8x128xf32>
      %cst_18 = arith.constant 3.906250e-03 : f32
      %35 = vector.broadcast %cst_18 : f32 to vector<8x128xf32>
      %36 = arith.mulf %34, %35 : vector<8x128xf32>
      %c0_19 = arith.constant 0 : index
      %c0_20 = arith.constant 0 : index
      %37 = vector.load %arg5[%c0_19, %c0_20] : memref<128x128xf32, #tpu.memory_space<vmem>>, vector<128x128xf32>
      %cst_21 = arith.constant dense<0.000000e+00> : vector<8x128xf32>
      %38 = tpu.matmul %36, %37, %cst_21 {dimension_numbers = #tpu.dot_dimension_numbers<[1], [0], [0], [1], [0, 0, 1, 1], [], []>} : vector<8x128xf32>, vector<128x128xf32>, vector<8x128xf32> -> vector<8x128xf32>
      %c0_22 = arith.constant 0 : index
      %c0_23 = arith.constant 0 : index
      %39 = vector.load %arg6[%c0_22, %c0_23] : memref<1x128xf32, #tpu.memory_space<vmem>>, vector<1x128xf32>
      %40 = vector.broadcast %39 : vector<1x128xf32> to vector<8x128xf32>
      %41 = arith.addf %38, %40 : vector<8x128xf32>
      %c0_24 = arith.constant 0 : index
      %c0_25 = arith.constant 0 : index
      %42 = vector.load %arg7[%c0_24, %c0_25] : memref<8x128xf32, #tpu.memory_space<vmem>>, vector<8x128xf32>
      tpu.vector_store %arg7[%c0_24, %c0_25], %41 {strides = array<i32>} : memref<8x128xf32, #tpu.memory_space<vmem>>, vector<8x128xf32>,
    } else {
    }
    return
  }
  func.func @transform_0(%arg0: i32, %arg1: i32) -> (i32, i32) {
    %c1_i32 = arith.constant 1 : i32
    %0 = arith.muli %arg0, %c1_i32 : i32
    %1 = arith.addi %0, %arg1 : i32
    %c0_i32 = arith.constant 0 : i32
    %c0_i32_0 = arith.constant 0 : i32
    return %1, %c0_i32 : i32, i32
  }
  func.func @transform_1(%arg0: i32, %arg1: i32) -> (i32, i32) {
    %c0_i32 = arith.constant 0 : i32
    %c0_i32_0 = arith.constant 0 : i32
    %c0_i32_1 = arith.constant 0 : i32
    return %c0_i32, %c0_i32_0 : i32, i32
  }
  func.func @transform_2(%arg0: i32, %arg1: i32) -> (i32, i32) {
    %c0_i32 = arith.constant 0 : i32
    %c0_i32_0 = arith.constant 0 : i32
    %c0_i32_1 = arith.constant 0 : i32
    return %c0_i32, %c0_i32_0 : i32, i32
  }
  func.func @transform_3(%arg0: i32, %arg1: i32) -> (i32, i32) {
    %c0_i32 = arith.constant 0 : i32
    %c0_i32_0 = arith.constant 0 : i32
    %c0_i32_1 = arith.constant 0 : i32
    return %c0_i32, %c0_i32_0 : i32, i32
  }
  func.func @transform_4(%arg0: i32, %arg1: i32) -> (i32, i32) {
    %c0_i32 = arith.constant 0 : i32
    %c0_i32_0 = arith.constant 0 : i32
    %c0_i32_1 = arith.constant 0 : i32
    return %c0_i32, %c0_i32_0 : i32, i32
  }
  func.func @transform_5(%arg0: i32, %arg1: i32) -> (i32, i32) {
    %c0_i32 = arith.constant 0 : i32
    %c0_i32_0 = arith.constant 0 : i32
    return %arg0, %c0_i32 : i32, i32
  }
}

</mosaic_0001>

<bundles_post_ra>
// kernel: tpu_custom_call.1
= control target key start
LH: loop header
LB: loop body
LE: loop exit
PB: predicated region body
PF: predicated region fallthrough
CT: control target
= control target key end

     0   :  { %10 = vsyncpa [#allocation4], 0  ;;  %s1524_s0 = inlined_call_operand.vmem [shape: bf16[512,32], index: 0, kind: input, shape index: {}]   ;;  %s1525_s1 = inlined_call_operand.vmem [shape: bf16[32,128], index: 1, kind: input, shape index: {}]   ;;  %s1526_s2 = inlined_call_operand.vmem [shape: f32[1,128], index: 2, kind: input, shape index: {}]   ;;  %s1527_s3 = inlined_call_operand.vmem [shape: f32[128,128], index: 3, kind: input, shape index: {}]   ;;  %s1528_s4 = inlined_call_operand.vmem [shape: f32[1,128], index: 4, kind: input, shape index: {}]   ;;  %s1529_s5 = inlined_call_operand.hbm [shape: f32[16,128], index: 5, kind: output, shape index: {}]  }
   0x1   :  { %12 = vsyncpa [#allocation4 + $0x1], 0  ;;  %s1259_s18 = smov 0   ;;  %s1261_s19 = smov 0  }
   0x2   :  { %s1263_s20 = smov 0   ;;  %s1265_s21 = smov 0  }
   0x3   :  { %s1267_s22 = smov 0   ;;  %s1269_s23 = smov 0  }
   0x4 LB: > { %s889_s24 = sadd.s32 4294967295, %s1223_s23   ;;  %s890_s25 = sadd.s32 4294967294, %s1223_s23   ;;  %s1223_s23 = sphi %s1269_s23, %s18_s23   ;;  %s1219_s22 = sphi %s1267_s22, %s1538_s22   ;;  %s1215_s21 = sphi %s1265_s21, %s1537_s21   ;;  %s1211_s20 = sphi %s1263_s20, %s1536_s20   ;;  %s1207_s19 = sphi %s1261_s19, %s1535_s19   ;;  %s1203_s18 = sphi %s1259_s18, %s1534_s18  }
   0x5   : > { %s30_s26 = sadd.s32 1, %s1219_s22  ;;  %s149_s27 = sadd.s32 1, %s1211_s20 }
   0x6   : > { %p32_p0 = scmp.ge.s32.totalorder %s30_s26, 2  ;;  %p159_p1 = scmp.ne.s32.totalorder %s1211_s20, %s1207_s19 }
   0x7   : > { %p160_p2 = scmp.eq.s32.totalorder %s889_s24, 1  ;;  %p165_p3 = scmp.ne.s32.totalorder %s1207_s19, %s1203_s18 }
   0x8   : > { %s1540_s26 = smov (%p32_p0, %s30_s26), 0  ;;  %p166_p5 = scmp.eq.s32.totalorder %s890_s25, 1 }
   0x9   : > { %p1299_p4 = por %p160_p2, %p159_p1  ;;  %s146_s29 = ssub.s32 %s1219_s22, %s1540_s26 }
   0xa   : > { %p893_p6 = scmp.ge.s32.totalorder %s1223_s23, 1  ;;  %p147_p7 = scmp.eq.s32.totalorder %s146_s29, 0 }
   0xb   : > { %p1306_p8 = por %p166_p5, %p165_p3  ;;  %p207_p9 = scmp.lt.s32.totalorder %s1223_s23, 3 }
   0xc   : > { %s1312_s6 = scalar_select %p147_p7, %s1211_s20, %s149_s27  }
   0xd   : > { %p208_p10 = pnand %p893_p6, %p207_p9 }
   0xe   : > { %s895_s9 = sshll.u32 (!%p208_p10), %s1215_s21, 5  ;;  %s233_s27 = sand.u32 (!%p208_p10), 1, %s1207_s19  }
   0xf   : > { %211 = sbr.rel (%p208_p10) target bundleno = 727 (0x2d7), region = 40  ;;  %p238_p11 = scmp.lt.s32.totalorder (!%p208_p10), %s895_s9, 63 }
  0x10   : > { %s894_s29 = sshll.u32 (!%p208_p10), %s233_s27, 3  ;;  %s1228_s17 = smov (!%p208_p10), [#allocation3]  }
  0x11   : > { %s235_s10 = scalar_lea.vmem (!%p208_p10), [#allocation3], %s894_s29 }
  0x12   : > { %s822_s11 = sshll.u32 (!%p208_p10), %s235_s10, 4  ;;  %s823_s11 = int_to_ptr.vmem [resolvable:$true] %s822_s11 }
  0x13   : > { %s1147_s16 = scalar_lea.vmem (!%p208_p10), %s823_s11, 128 }
  0x14   : > { %v1129_v0 = vld [vmem:[%s1525_s1 + $0x8] sm:$0xff]   ;;  %v1130_v1 = vld [vmem:[%s1525_s1] sm:$0xff]   ;;  %s1542_s9 = smov (!%p238_p11, %s895_s9), 63  ;;  %vm385_vm0 = vcmask 261120   ;;  %v643_v18 = vlaneseq  ;;  %v1225_v24 = vmov 1.0|1.0   ;;  %p1148_p12 = scmp.ne.s32.totalorder %s823_s11, %s1147_s16 }
  0x15   : > { %1000 = vmatprep.subr.bf16.mxu0 %v1129_v0  ;;  %s896_s12 = sshll.u32 %s1542_s9, 2  ;;  %v1366_v27 = vld [vmem:[%s1526_s2] ss:$0 sm:$0xff]  ;;  %v727_v25 = vld [vmem:[%s1527_s3 + $0x68] sm:$0xff]  ;;  %vm1227_vm9 = vmmov 0   ;;  %s940_s9 = sshll.u32 %s1215_s21, 7 }
  0x16   : > { %1001 = vmatpush3.bf16.msra.mxu0 %v1129_v0  ;;  %s1324_s15 = scalar_lea.vmem %s1524_s0, %s896_s12  ;;  %v644_v19 = vshrl.u32 %v643_v18, 7  ;;  %v646_v20 = vand.u32 127, %v643_v18  ;;  %s1484_s14 = scalar_lea.hbm %s1529_s5, %s940_s9 }
  0x17   : > { %1002 = vmatprep.subr.bf16.mxu0 %v1130_v1  ;;  %v1131_v2 = vld [vmem:[%s1324_s15] sm:$0xff]   ;;  %v1132_v3 = vld [vmem:[%s1324_s15 + $0x8] sm:$0xff]   ;;  %v1133_v4 = vld [vmem:[%s1324_s15 + $0x10] sm:$0xff]   ;;  %p1149_p13 = pnand %p1148_p12, %p1299_p4  ;;  %s1151_s21 = sshll.u32 %s1228_s17, 4  ;;  %s1152_s21 = int_to_ptr.vmem [resolvable:$false] %s1151_s21 }
  0x18   : > { %1004 = vmatprep.mubr.msk.bf16.mxu0 %vm385_vm0, %v1131_v2  ;;  %v1134_v5 = vld [vmem:[%s1324_s15 + $0x18] sm:$0xff]   ;;  %v1135_v6 = vld [vmem:[%s1324_s15 + $0x20] sm:$0xff]   ;;  %v1136_v7 = vld [vmem:[%s1324_s15 + $0x28] sm:$0xff]   ;;  %v652_v21 = vmul.u32 256, %v644_v19  ;;  %v647_v22 = vadd.s32 128, %v646_v20  ;;  %s1153_s24 = scalar_lea.vmem %s1152_s21, 256  ;;  %p1154_p1 = scmp.lt.s32.totalorder %s823_s11, %s1152_s21 }
  0x19   : > { %v1137_v8 = vld [vmem:[%s1324_s15 + $0x30] sm:$0xff]   ;;  %v1138_v9 = vld [vmem:[%s1324_s15 + $0x38] sm:$0xff]   ;;  %v1139_v10 = vld [vmem:[%s1324_s15 + $0x40] sm:$0xff]   ;;  %p1150_p0 = pneg %p1149_p13  ;;  %p1155_p2 = scmp.lt.s32.totalorder %s1153_s24, %s1147_s16 }
  0x1a   : > { %1003 = vmatpush3.bf16.msra.mxu0 %v1130_v1  ;;  %v1140_v11 = vld [vmem:[%s1324_s15 + $0x48] sm:$0xff]   ;;  %v1141_v12 = vld [vmem:[%s1324_s15 + $0x50] sm:$0xff]   ;;  %v1142_v13 = vld [vmem:[%s1324_s15 + $0x58] sm:$0xff]   ;;  %v655_v23 = vadd.s32 256, %v652_v21  ;;  %vm654_vm1 = vcmp.ge.s32.totalorder %v647_v22, %v652_v21  ;;  %vm653_vm4 = vcmp.ge.s32.totalorder %v646_v20, %v652_v21 }
  0x1b   : > { %v1143_v14 = vld [vmem:[%s1324_s15 + $0x60] sm:$0xff]   ;;  %v1144_v15 = vld [vmem:[%s1324_s15 + $0x68] sm:$0xff]   ;;  %v1145_v16 = vld [vmem:[%s1324_s15 + $0x70] sm:$0xff]   ;;  %p1156_p3 = por %p1155_p2, %p1154_p1 }
  0x1c   : > { %v1146_v17 = vld [vmem:[%s1324_s15 + $0x78] sm:$0xff]   ;;  %vm657_vm2 = vcmp.lt.s32.totalorder %v647_v22, %v655_v23  ;;  %vm656_vm5 = vcmp.lt.s32.totalorder %v646_v20, %v655_v23  ;;  %s809_s15 = scalar_lea.sflag [#allocation4], %s233_s27 }
  0x1d   : > { %1005 = vmatmul.mubr.msk.bf16.vlgmr.msra.gmra.mxu0 %vm385_vm0, %v1132_v3  ;;  %vm659_vm3 = vmand %vm654_vm1, %vm657_vm2  ;;  %p1157_p5 = pnand %p1156_p3, %p1150_p0 }
  0x1e   : > { %1008 = vmatprep.mubr.msk.bf16.mxu0 %vm385_vm0, %v1133_v4  ;;  %vm934_vm6 = vmpackc.low %vm659_vm3, %vm659_vm3 }
  0x1f   : > { %935 = vmatprep.mubr.msk.bf16.mxu1 %vm934_vm6, %v1225_v24  ;;  %vm1359_vm7 = vmand %vm653_vm4, %vm656_vm5 }
  0x20   : > { %vm936_vm8 = vmpackc.low %vm1359_vm7, %vm1359_vm7 }
  0x25   : > { %1009 = vmatmul.mubr.msk.bf16.gmra.mxu0 %vm385_vm0, %v1134_v5 }
  0x26   : > { %1012 = vmatprep.mubr.msk.bf16.mxu0 %vm385_vm0, %v1135_v6 }
  0x2d   : > { %1013 = vmatmul.mubr.msk.bf16.gmra.mxu0 %vm385_vm0, %v1136_v7 }
  0x2e   : > { %1016 = vmatprep.mubr.msk.bf16.mxu0 %vm385_vm0, %v1137_v8 }
  0x35   : > { %1017 = vmatmul.mubr.msk.bf16.gmra.mxu0 %vm385_vm0, %v1138_v9 }
  0x36   : > { %1020 = vmatprep.mubr.msk.bf16.mxu0 %vm385_vm0, %v1139_v10 }
  0x3d   : > { %1021 = vmatmul.mubr.msk.bf16.gmra.mxu0 %vm385_vm0, %v1140_v11 }
  0x3e   : > { %1024 = vmatprep.mubr.msk.bf16.mxu0 %vm385_vm0, %v1141_v12 }
  0x45   : > { %1025 = vmatmul.mubr.msk.bf16.gmra.mxu0 %vm385_vm0, %v1142_v13 }
  0x46   : > { %1028 = vmatprep.mubr.msk.bf16.mxu0 %vm385_vm0, %v1143_v14 }
  0x4d   : > { %1029 = vmatmul.mubr.msk.bf16.gmra.mxu0 %vm385_vm0, %v1144_v15 }
  0x4e   : > { %1032 = vmatprep.mubr.msk.bf16.mxu0 %vm385_vm0, %v1145_v16 }
  0x55   : > { %1033 = vmatmul.mubr.msk.bf16.gmra.mxu0 %vm385_vm0, %v1146_v17 }
  0xdd   : > { %v1006_v26 = vpop.f32.mrf.mxu0 }
  0xde   : > { %v477_v29 = vadd.f32 %v1006_v26, %v1366_v27 }
  0xdf   : > { %v468_v28 = vpop.f32.mrf.mxu0 }
  0xe0   : > { %v469_v31 = vadd.f32 %v1366_v27, %v468_v28  ;;  %v597_v34 = vmax.f32 %v477_v29, 0.0 }
  0xe1   : > { %v1007_v30 = vpop.f32.mrf.mxu0 }
  0xe2   : > { %v480_v32 = vadd.f32 %v1007_v30, %v1366_v27  ;;  %v595_v38 = vmax.f32 %v469_v31, 0.0 }
  0xe3   : > { %v471_v33 = vpop.f32.mrf.mxu0 }
  0xe4   : > { %v598_v35 = vmax.f32 %v480_v32, 0.0  ;;  %v472_v36 = vadd.f32 %v1366_v27, %v471_v33 }
  0xe5   : > { %v1010_v37 = vpop.f32.mrf.mxu0 }
  0xe6   : > { %v1372_v39 = vpack.c.bf16 %v598_v35, %v597_v34  ;;  %v596_v40 = vmax.f32 %v472_v36, 0.0  ;;  %v493_v43 = vadd.f32 %v1010_v37, %v1366_v27 }
  0xe7   : > { %v484_v41 = vpop.f32.mrf.mxu0 }
  0xe8   : > { %v1374_v42 = vpack.c.bf16 %v596_v40, %v595_v38  ;;  %v485_v45 = vadd.f32 %v1366_v27, %v484_v41  ;;  %v601_v48 = vmax.f32 %v493_v43, 0.0 }
  0xe9   : > { %v1011_v44 = vpop.f32.mrf.mxu0 }
  0xea   : > { %v496_v46 = vadd.f32 %v1011_v44, %v1366_v27  ;;  %v599_v52 = vmax.f32 %v485_v45, 0.0 }
  0xeb   : > { %v487_v47 = vpop.f32.mrf.mxu0 }
  0xec   : > { %v602_v49 = vmax.f32 %v496_v46, 0.0  ;;  %v488_v50 = vadd.f32 %v1366_v27, %v487_v47 }
  0xed   : > { %v1014_v51 = vpop.f32.mrf.mxu0 }
  0xee   : > { %v1380_v53 = vpack.c.bf16 %v602_v49, %v601_v48  ;;  %v600_v54 = vmax.f32 %v488_v50, 0.0  ;;  %v509_v43 = vadd.f32 %v1014_v51, %v1366_v27 }
  0xef   : > { %v500_v55 = vpop.f32.mrf.mxu0 }
  0xf0   : > { %v1382_v56 = vpack.c.bf16 %v600_v54, %v599_v52 }
  0xf1   : > { %v1015_v57 = vpop.f32.mrf.mxu0 }
  0xf2   : > { %v512_v35 = vadd.f32 %v1015_v57, %v1366_v27  ;;  %v605_v57 = vmax.f32 %v509_v43, 0.0 }
  0xf3   : > { %v503_v58 = vpop.f32.mrf.mxu0 }
  0xf4   : > { %v606_v47 = vmax.f32 %v512_v35, 0.0  ;;  %v504_v48 = vadd.f32 %v1366_v27, %v503_v58 }
  0xf5   : > { %v1018_v59 = vpop.f32.mrf.mxu0 }
  0xf6   : > { %v525_v15 = vadd.f32 %v1018_v59, %v1366_v27  ;;  %v501_v59 = vadd.f32 %v1366_v27, %v500_v55 }
  0xf7   : > { %v516_v60 = vpop.f32.mrf.mxu0 }
  0xf8   : > { %v609_v29 = vmax.f32 %v525_v15, 0.0  ;;  %v517_v30 = vadd.f32 %v1366_v27, %v516_v60  ;;  %v603_v58 = vmax.f32 %v501_v59, 0.0 }
  0xf9   : > { %v1019_v61 = vpop.f32.mrf.mxu0 }
  0xfa   : > { %v528_v12 = vadd.f32 %v1019_v61, %v1366_v27  ;;  %v607_v44 = vmax.f32 %v517_v30, 0.0  ;;  %v632_v61 = vpack.c.bf16 %v606_v47, %v605_v57  ;;  %v714_v30 = vld [vmem:[%s1527_s3] sm:$0xff] }
  0xfb   : > { %v519_v62 = vpop.f32.mrf.mxu0 }
  0xfc   : > { %v610_v19 = vmax.f32 %v528_v12, 0.0  ;;  %v520_v20 = vadd.f32 %v1366_v27, %v519_v62  ;;  %v604_v62 = vmax.f32 %v504_v48, 0.0 }
  0xfd   : > { %v1384_v63 = vpop.f32.mrf.mxu0 }
  0xfe   : > { %v608_v36 = vmax.f32 %v520_v20, 0.0  ;;  %v634_v37 = vpack.c.bf16 %v610_v19, %v609_v29  ;;  %v721_v20 = vld [vmem:[%s1527_s3 + $0x38] sm:$0xff]  ;;  %v715_v29 = vld [vmem:[%s1527_s3 + $0x8] sm:$0xff] }
  0xff   : > { %v1386_v0 = vpop.f32.mrf.mxu0 }
 0x100   : > { %v633_v49 = vpack.c.bf16 %v608_v36, %v607_v44 }
 0x101   : > { %v1388_v1 = vpop.f32.mrf.mxu0 }
 0x102   : > { %v544_v55 = vadd.f32 %v1388_v1, %v1366_v27 }
 0x103   : > { %v1390_v2 = vpop.f32.mrf.mxu0 }
 0x104   : > { %v536_v15 = vadd.f32 %v1366_v27, %v1390_v2  ;;  %v722_v2 = vld [vmem:[%s1527_s3 + $0x40] sm:$0xff] }
 0x105   : > { %v1026_v3 = vpop.f32.mrf.mxu0 }
 0x106   : > { %v557_v51 = vadd.f32 %v1026_v3, %v1366_v27 }
 0x107   : > { %v548_v4 = vpop.f32.mrf.mxu0 }
 0x109   : > { %v1027_v5 = vpop.f32.mrf.mxu0 }
 0x10a   : > { %v560_v50 = vadd.f32 %v1027_v5, %v1366_v27  ;;  %v549_v5 = vadd.f32 %v1366_v27, %v548_v4 }
 0x10b   : > { %v551_v6 = vpop.f32.mrf.mxu0 }
 0x10d   : > { %v1030_v7 = vpop.f32.mrf.mxu0 }
 0x10e   : > { %v573_v31 = vadd.f32 %v1030_v7, %v1366_v27  ;;  %v618_v7 = vmax.f32 %v560_v50, 0.0 }
 0x10f   : > { %v564_v8 = vpop.f32.mrf.mxu0 }
 0x110   : > { %v621_v45 = vmax.f32 %v573_v31, 0.0  ;;  %v565_v46 = vadd.f32 %v1366_v27, %v564_v8  ;;  %v552_v8 = vadd.f32 %v1366_v27, %v551_v6  ;;  %v614_v6 = vmax.f32 %v544_v55, 0.0 }
 0x111   : > { %v1031_v9 = vpop.f32.mrf.mxu0 }
 0x112   : > { %v576_v22 = vadd.f32 %v1031_v9, %v1366_v27  ;;  %v619_v60 = vmax.f32 %v565_v46, 0.0  ;;  %v616_v3 = vmax.f32 %v552_v8, 0.0 }
 0x113   : > { %v567_v10 = vpop.f32.mrf.mxu0 }
 0x114   : > { %v622_v38 = vmax.f32 %v576_v22, 0.0  ;;  %v568_v40 = vadd.f32 %v1366_v27, %v567_v10  ;;  %v617_v10 = vmax.f32 %v557_v51, 0.0  ;;  %v719_v22 = vld [vmem:[%s1527_s3 + $0x28] sm:$0xff] }
 0x115   : > { %v1034_v11 = vpop.f32.mrf.mxu0 }
 0x116   : > { %v589_v14 = vadd.f32 %v1034_v11, %v1366_v27  ;;  %v640_v52 = vpack.c.bf16 %v622_v38, %v621_v45  ;;  %v620_v54 = vmax.f32 %v568_v40, 0.0  ;;  %v631_v11 = vpack.c.bf16 %v604_v62, %v603_v58 }
 0x117   : > { %v580_v13 = vpop.f32.mrf.mxu0  ;;  %v638_v12 = vpack.c.bf16 %v618_v7, %v617_v10 }
 0x118   : > { %v581_v17 = vadd.f32 %v1366_v27, %v580_v13  ;;  %v625_v23 = vmax.f32 %v589_v14, 0.0  ;;  %v639_v9 = vpack.c.bf16 %v620_v54, %v619_v60  ;;  %v541_v13 = vadd.f32 %v1384_v63, %v1366_v27 }
 0x119   : > { %v1035_v16 = vpop.f32.mrf.mxu0  ;;  %v615_v14 = vmax.f32 %v549_v5, 0.0 }
 0x11a   : > { %v592_v18 = vadd.f32 %v1035_v16, %v1366_v27  ;;  %v623_v32 = vmax.f32 %v581_v17, 0.0  ;;  %v613_v4 = vmax.f32 %v541_v13, 0.0  ;;  %v533_v17 = vadd.f32 %v1366_v27, %v1386_v0  ;;  %v723_v0 = vld [vmem:[%s1527_s3 + $0x48] sm:$0xff] }
 0x11b   : > { %v583_v21 = vpop.f32.mrf.mxu0  ;;  %v637_v16 = vpack.c.bf16 %v616_v3, %v615_v14 }
 0x11c   : > { %v626_v26 = vmax.f32 %v592_v18, 0.0  ;;  %v584_v28 = vadd.f32 %v1366_v27, %v583_v21  ;;  %v636_v1 = vpack.c.bf16 %v614_v6, %v613_v4  ;;  %v612_v18 = vmax.f32 %v536_v15, 0.0  ;;  %v729_v27 = vld [vmem:[%s1527_s3 + $0x78] sm:$0xff]  ;;  %v720_v21 = vld [vmem:[%s1527_s3 + $0x30] sm:$0xff] }
 0x11d   : > { %v611_v19 = vmax.f32 %v533_v17, 0.0 }
 0x11e   : > { %v624_v33 = vmax.f32 %v584_v28, 0.0  ;;  %v642_v34 = vpack.c.bf16 %v626_v26, %v625_v23  ;;  %v718_v23 = vld [vmem:[%s1527_s3 + $0x20] sm:$0xff]  ;;  %v717_v26 = vld [vmem:[%s1527_s3 + $0x18] sm:$0xff]  ;;  %v716_v28 = vld [vmem:[%s1527_s3 + $0x10] sm:$0xff] }
 0x11f   : > { %v635_v63 = vpack.c.bf16 %v612_v18, %v611_v19 }
 0x120   : > { %v641_v41 = vpack.c.bf16 %v624_v33, %v623_v32  ;;  %961 = vmatprep.subr.bf16.mxu1 %v642_v34 }
 0x121   : > { %962 = vmatpush3.bf16.msra.mxu1 %v634_v37  ;;  %v938_v37 = vld [vmem:[%s1528_s4] ss:$0 sm:$0xff] }
 0x122   : > { %963 = vmatprep.subr.bf16.mxu1 %v641_v41 }
 0x125   : > { %964 = vmatpush3.bf16.msra.mxu1 %v633_v49 }
 0x126   : > { %965 = vmatprep.subr.bf16.mxu1 %v640_v52 }
 0x129   : > { %966 = vmatpush3.bf16.msra.mxu1 %v632_v61 }
 0x12a   : > { %967 = vmatprep.subr.bf16.mxu1 %v639_v9 }
 0x12d   : > { %968 = vmatpush3.bf16.msra.mxu1 %v631_v11 }
 0x12e   : > { %969 = vmatprep.subr.bf16.mxu1 %v638_v12 }
 0x131   : > { %970 = vmatpush3.bf16.msra.mxu1 %v1380_v53  ;;  %v1226_v53 = vmov 0.0  }
 0x132   : > { %971 = vmatprep.subr.bf16.mxu1 %v637_v16 }
 0x135   : > { %972 = vmatpush3.bf16.msra.mxu1 %v1382_v56  ;;  %v728_v56 = vld [vmem:[%s1527_s3 + $0x70] sm:$0xff] }
 0x136   : > { %973 = vmatprep.subr.bf16.mxu1 %v636_v1 }
 0x139   : > { %974 = vmatpush3.bf16.msra.mxu1 %v1372_v39  ;;  %v726_v39 = vld [vmem:[%s1527_s3 + $0x60] sm:$0xff] }
 0x13a   : > { %975 = vmatprep.subr.bf16.mxu1 %v635_v63 }
 0x13d   : > { %976 = vmatpush3.bf16.msra.mxu1 %v1374_v42  ;;  %v724_v42 = vld [vmem:[%s1527_s3 + $0x50] sm:$0xff] }
 0x13e   : > { %1036 = vmatprep.subr.mxu1 %v1226_v53 }
 0x140   : > { %937 = vmatmul.mubr.msk.bf16.vlgmr.msra.gmra.mxu1 %vm936_vm8, %v1225_v24  ;;  %v725_v24 = vld [vmem:[%s1527_s3 + $0x58] sm:$0xff] }
 0x141   : > { %1037 = vmatpush3.msra.mxu1 %v729_v27  ;;  %1068 = vmatprep.mubr.msk.f32.mxu1 %vm1227_vm9, %v1226_v53 }
 0x142   : > { %1038 = vmatprep.subr.mxu1 %v1226_v53 }
 0x143   : > { %1039 = vmatpush3.msra.mxu1 %v728_v56 }
 0x144   : > { %1040 = vmatprep.subr.mxu1 %v1226_v53 }
 0x145   : > { %1041 = vmatpush3.msra.mxu1 %v727_v25 }
 0x146   : > { %1042 = vmatprep.subr.mxu1 %v1226_v53 }
 0x147   : > { %1043 = vmatpush3.msra.mxu1 %v726_v39 }
 0x148   : > { %1044 = vmatprep.subr.mxu1 %v1226_v53 }
 0x149   : > { %1045 = vmatpush3.msra.mxu1 %v725_v24 }
 0x14a   : > { %1046 = vmatprep.subr.mxu1 %v1226_v53 }
 0x14b   : > { %1047 = vmatpush3.msra.mxu1 %v724_v42 }
 0x14c   : > { %1048 = vmatprep.subr.mxu1 %v1226_v53 }
 0x14d   : > { %1049 = vmatpush3.msra.mxu1 %v723_v0 }
 0x14e   : > { %1050 = vmatprep.subr.mxu1 %v1226_v53 }
 0x14f   : > { %1051 = vmatpush3.msra.mxu1 %v722_v2 }
 0x150   : > { %1052 = vmatprep.subr.mxu1 %v1226_v53 }
 0x151   : > { %1053 = vmatpush3.msra.mxu1 %v721_v20 }
 0x152   : > { %1054 = vmatprep.subr.mxu1 %v1226_v53 }
 0x153   : > { %1055 = vmatpush3.msra.mxu1 %v720_v21 }
 0x154   : > { %1056 = vmatprep.subr.mxu1 %v1226_v53 }
 0x155   : > { %1057 = vmatpush3.msra.mxu1 %v719_v22 }
 0x156   : > { %1058 = vmatprep.subr.mxu1 %v1226_v53 }
 0x157   : > { %1059 = vmatpush3.msra.mxu1 %v718_v23 }
 0x158   : > { %1060 = vmatprep.subr.mxu1 %v1226_v53 }
 0x159   : > { %1061 = vmatpush3.msra.mxu1 %v717_v26 }
 0x15a   : > { %1062 = vmatprep.subr.mxu1 %v1226_v53 }
 0x15b   : > { %1063 = vmatpush3.msra.mxu1 %v716_v28 }
 0x15c   : > { %1064 = vmatprep.subr.mxu1 %v1226_v53 }
 0x15d   : > { %1065 = vmatpush3.msra.mxu1 %v715_v29 }
 0x15e   : > { %1066 = vmatprep.subr.mxu1 %v1226_v53 }
 0x15f   : > { %1067 = vmatpush3.msra.mxu1 %v714_v30 }
 0x200   : > { %v977_v31 = vpop.f32.mrf.mxu1 }
 0x202   : > { %v978_v32 = vpop.f32.mrf.mxu1 }
 0x203   : > { %v979_v33 = vadd.f32 %v978_v32, %v977_v31 }
 0x204   : > { %v980_v34 = vpop.f32.mrf.mxu1 }
 0x205   : > { %v713_v35 = vmul.f32 0.00390625, %v979_v33 }
 0x206   : > { %v981_v36 = vpop.f32.mrf.mxu1 }
 0x207   : > { %1069 = vmatmul.mubr.f32.vlgmr.msra.gmra.mxu1 %v713_v35 }
 0x2c7   : > { %v803_v38 = vpop.f32.mrf.mxu1 }
 0x2c8   : > { %v804_v40 = vadd.f32 %v938_v37, %v803_v38 }
 0x2c9   : > { %v1070_v41 = vpop.f32.mrf.mxu1 }
 0x2ca   : > { %807 = vst [vmem:[%s235_s10] sm:$0xff] %v804_v40 }
 0x2cb   : > { %1160 = shalt.err (!%p1157_p5)
}
 0x2cc   : > { %s1161_s25 = scalar_lea.hbm %s1484_s14, 128  ;;  %s1165_s7 = scalar_lea.hbm %s1529_s5, 256 }
 0x2cd   : > { %p1162_p6 = scmp.ne.s32.totalorder %s1484_s14, %s1161_s25  ;;  %p1166_p10 = scmp.lt.s32.totalorder %s1484_s14, %s1529_s5 }
 0x2ce   : > { %p1167_p11 = scmp.lt.s32.totalorder %s1165_s7, %s1161_s25 }
 0x2cf   : > { %p1163_p7 = pnand %p1162_p6, %p1299_p4 }
 0x2d0   : > { %p1168_p12 = por %p1167_p11, %p1166_p10 }
 0x2d1   : > { %p1164_p9 = pneg %p1163_p7 }
 0x2d3   : > { %p1169_p13 = pnand %p1168_p12, %p1164_p9 }
 0x2d5   : > { %1172 = shalt.err (!%p1169_p13)
}
 0x2d6   : > { %1071 = dma.vmem_to_hbm [thread:$0]  (%p1299_p4), %s823_s11, 128, %s1484_s14, %s809_s15  }
 0x2d7 PF: > { %p1077_p0 = scmp.ge.s32.totalorder %s1223_s23, 2  ;;  %s834_s10 = sand.u32 1, %s1203_s18  }
 0x2d8   : > { %s835_s12 = scalar_lea.sflag [#allocation4], %s834_s10 }
 0x2d9   : > { %p1074_p1 = pnand %p1077_p0, %p1306_p8 }
 0x2db   : > { %p1075_p2 = pneg %p1074_p1 }
 0x2dd   : > { %1198 = dma.done.wait (%p1075_p2), %s835_s12, 128  }
 0x2de   : > { %1200 = vsyncadd (%p1075_p2), %s835_s12, 4294967168  ;;  %s18_s23 = sadd.s32 1, %s1223_s23   ;;  %s1534_s18 = smov %s1207_s19 }
 0x2df   : > { %p15_p3 = scmp.ge.s32.totalorder %s18_s23, 4   ;;  %s1535_s19 = smov %s1211_s20 }
 0x2e0   : > { %s1536_s20 = smov %s1312_s6  ;;  %s1537_s21 = smov %s1219_s22 }
 0x2e1   : > { %s1538_s22 = smov %s1540_s26  ;;  %17 = sbr.rel (!%p15_p3) target bundleno = 4 (0x4), region = 83 }
 0x2e6   :  { %840 = vsyncpa [#allocation4], 1 }
 0x2e7   :  { %842 = vsyncpa [#allocation4 + $0x1], 1 }

</bundles_post_ra>
